<compile_context>
chip_gen: v7x
topology: tpu7x:2x2x1
jax: 0.10.0
libtpu: 0.0.40
codegen_flags: <defaults>
</compile_context>

<pallas_src>
import functools

import jax
import jax.numpy as jnp
from jax import lax
from jax.experimental import pallas as pl
from jax.experimental.pallas import tpu as pltpu

G_RATIO = 0.5      # module default g_ratio
TMAX_RATIO = 0.25  # module default Tmax; module is in .training mode by default
LANES = 128


def _astar_forward_kernel(t_max, idx_ref, h_ref, combo_ref,
                          hist_ref, parents_ref, t_ref):
    """A* expansion loop. Writes histories, parents (int32) and the final step index."""
    R, L = h_ref.shape                         # (N_pad // 128, 128)
    n_pad = R * L
    start = idx_ref[0]
    goal = idx_ref[1]

    # Node index of each (sublane, lane) position in the packed layout.
    idx2d = (lax.broadcasted_iota(jnp.int32, (R, L), 0) * L
             + lax.broadcasted_iota(jnp.int32, (R, L), 1))

    h = h_ref[...]                             # heuristic = cost_maps

    # g = preprocessed weighted_adj[start]: "no edge" sentinel (inf) -> 0, diag -> 0.
    crow0 = combo_ref[pl.ds(start, 1), :, :].reshape(R, L)
    g0 = jnp.where((crow0 == jnp.inf) | (idx2d == start), 0.0, crow0)

    open0 = (idx2d == start).astype(jnp.float32)          # open_maps
    hist0 = jnp.zeros((R, L), jnp.float32)                # histories
    parents0 = jnp.full((R, L), goal, jnp.int32)          # parents = goal everywhere

    def cond(carry):
        _, _, _, _, t, _, done = carry
        return jnp.logical_and(t < t_max, done == 0)

    def body(carry):
        g, open_m, hist, parents, t, _, _ = carry

        # --- selection: exact argmin of f over the open set, smallest index on ties
        # (exp(-f/sqrt(N)) in the reference is monotone, so argmax f_exp == argmin f).
        f = G_RATIO * g + (1.0 - G_RATIO) * h
        f_open = jnp.where(open_m > 0.0, f, jnp.inf)
        f_min = jnp.min(f_open)
        sel = jnp.min(jnp.where(f_open == f_min, idx2d, n_pad))
        solved = sel == goal                               # scalar goal test

        sel_hot = idx2d == sel
        hist_n = jnp.where(sel_hot, 1.0, hist)             # clamp(hist + onehot, 0, 1)

        # g[sel].  TODO(synk): (1,1) read from a VMEM mirror of g for large N.
        g_sel = jnp.sum(jnp.where(sel_hot, g, 0.0))

        # Row gather directly in the packed layout; inf == "no edge" sentinel.
        crow = combo_ref[pl.ds(sel, 1), :, :].reshape(R, L)
        neighbor = crow != jnp.inf                         # adj row (diag excluded)
        g2 = g_sel + crow                                  # only consumed where neighbor

        newly = (open_m == 0.0) & (hist_n == 0.0)          # (1-open)*(1-hist)
        improve = (open_m > 0.0) & (g > g2)                # open*(g>g2)
        upd = (newly | improve) & neighbor                 # reference idx, exactly {0,1}

        g_n = jnp.where(upd, g2, g)
        open_n = jnp.where(upd, 1.0, open_m)               # clamp(open + idx, 0, 1)
        parents_n = jnp.where(upd, sel, parents)

        return (g_n, open_n, hist_n, parents_n, t + 1, t, solved.astype(jnp.int32))

    init = (g0, open0, hist0, parents0, jnp.int32(0), jnp.int32(0), jnp.int32(0))
    _, _, hist, parents, _, t_final, _ = lax.while_loop(cond, body, init)

    hist_ref[...] = hist
    parents_ref[...] = parents
    t_ref[0] = t_final


def _backtrack_kernel(idx_ref, parents_ref, t_ref, path_ref):
    """backtrack(): scalar parent-chasing in SMEM, bounded by the dynamic t_final."""
    R, L = path_ref.shape
    goal = idx_ref[1]
    idx2d = (lax.broadcasted_iota(jnp.int32, (R, L), 0) * L
             + lax.broadcasted_iota(jnp.int32, (R, L), 1))

    path0 = (idx2d == goal).astype(jnp.int32)              # path_maps = goal one-hot
    loc0 = parents_ref[goal]                               # loc = parents[goal]

    def body(_, carry):
        path, loc = carry
        path = jnp.where(idx2d == loc, jnp.int32(1), path)  # path_maps[loc] = 1
        loc = parents_ref[loc]                               # scalar SMEM chase
        return path, loc

    # TODO(synk): for large N accumulate into an SMEM buffer with scalar writes
    #             instead of a full-width select per step.
    path, _ = lax.fori_loop(0, t_ref[0], body, (path0, loc0))
    path_ref[...] = path


def differentiable_astar(start_index, goal_index, cost_maps, nodes, adj, weighted_adj):
    """Training-mode forward of DifferentiableAstar_backup. Returns (histories, path_maps)."""
    N = int(nodes.shape[0])
    assert cost_maps.shape == (N,) and adj.shape == (N, N) and weighted_adj.shape == (N, N)

    n_pad = ((N + LANES - 1) // LANES) * LANES
    R = n_pad // LANES

    idx = jnp.array([start_index, goal_index], dtype=jnp.int32)

    # Combined edge matrix: preprocessed weight where there is an edge, +inf sentinel
    # where there is none (diagonal included).  Folds the reference's in-place
    # preprocessing (weighted_adj inf->0, fill_diagonal_(0), adj.fill_diagonal_(0)).
    # TODO(synk): assumes 0/1 graph adjacency (the module's intended use); non-binary
    #             adj values (fractional neighbour weights blended into idx) would need
    #             a separate resident adjacency matrix.
    adj_b = adj != 0
    eye = jnp.eye(N, dtype=bool)
    w_pre = jnp.where(weighted_adj == jnp.inf, 0.0, weighted_adj).astype(jnp.float32)
    combo = jnp.where(adj_b & ~eye, w_pre, jnp.inf)

    combo_p = jnp.full((n_pad, n_pad), jnp.inf, jnp.float32).at[:N, :N].set(combo)
    combo3 = combo_p.reshape(n_pad, R, LANES)              # row gather lands packed
    h_p = jnp.zeros((n_pad,), jnp.float32).at[:N].set(
        cost_maps.astype(jnp.float32)).reshape(R, LANES)

    t_max = int(TMAX_RATIO * N)                            # training-mode Tmax

    # Generation-aware VMEM budget: one resident f32 n_pad x n_pad matrix + state.
    vmem_needed = n_pad * n_pad * 4 + 32 * n_pad * 4 + (2 << 20)
    try:
        vmem_cap = int(pltpu.get_tpu_info().vmem_capacity_bytes)
    except Exception:
        vmem_cap = 64 * 2 ** 20
    vmem_limit = int(min(max(vmem_needed, 8 * 2 ** 20), int(vmem_cap * 0.85)))
    # TODO(synk): when vmem_needed exceeds the cap, switch to the HBM row-DMA path.

    hist, parents_i, t_arr = pl.pallas_call(
        functools.partial(_astar_forward_kernel, t_max),
        out_shape=(
            jax.ShapeDtypeStruct((R, LANES), jnp.float32),   # histories
            jax.ShapeDtypeStruct((R, LANES), jnp.int32),     # parents
            jax.ShapeDtypeStruct((1,), jnp.int32),           # final step index
        ),
        in_specs=[
            pl.BlockSpec(memory_space=pltpu.MemorySpace.SMEM),   # [start, goal]
            pl.BlockSpec(memory_space=pltpu.MemorySpace.VMEM),   # h (R, 128)
            pl.BlockSpec(memory_space=pltpu.MemorySpace.VMEM),   # combo (n_pad, R, 128)
        ],
        out_specs=(
            pl.BlockSpec(memory_space=pltpu.MemorySpace.VMEM),
            pl.BlockSpec(memory_space=pltpu.MemorySpace.VMEM),
            pl.BlockSpec(memory_space=pltpu.MemorySpace.SMEM),
        ),
        compiler_params=pltpu.CompilerParams(vmem_limit_bytes=vmem_limit),
    )(idx, h_p, combo3)

    path = pl.pallas_call(
        _backtrack_kernel,
        out_shape=jax.ShapeDtypeStruct((R, LANES), jnp.int32),   # path_maps (torch: long)
        in_specs=[
            pl.BlockSpec(memory_space=pltpu.MemorySpace.SMEM),   # [start, goal]
            pl.BlockSpec(memory_space=pltpu.MemorySpace.SMEM),   # parents (n_pad,) int32
            pl.BlockSpec(memory_space=pltpu.MemorySpace.SMEM),   # t_final (1,) int32
        ],
        out_specs=pl.BlockSpec(memory_space=pltpu.MemorySpace.VMEM),
    )(idx, parents_i.reshape(n_pad), t_arr)

    histories = hist.reshape(n_pad)[:N]
    path_maps = path.reshape(n_pad)[:N]
    return histories, path_maps


if __name__ == "__main__":
    # TODO(synk): eval-mode extras (ordered_path python list, (1-histories) re-weighting
    #             with empty-open break, store_intermediate_results dict list) are
    #             host-side / data-dependent python control flow, not kernelized.
    key = jax.random.PRNGKey(0)
    N = 128
    k1, k2, k3, k4 = jax.random.split(key, 4)

    nodes = jax.random.uniform(k4, (N, 2), dtype=jnp.float32)          # only size(0) used
    p = jax.random.uniform(k1, (N, N))
    adj = (p < 0.06).astype(jnp.float32)
    adj = jnp.maximum(adj, adj.T)                                      # symmetric 0/1 adjacency
    w = jax.random.uniform(k2, (N, N), minval=0.5, maxval=2.0, dtype=jnp.float32)
    weighted_adj = jnp.where(adj > 0, w, jnp.inf)                      # inf where no edge
    cost_maps = jax.random.uniform(k3, (N,), minval=0.0, maxval=10.0, dtype=jnp.float32)

    start_index, goal_index = 3, 100

    histories, path_maps = differentiable_astar(
        start_index, goal_index, cost_maps, nodes, adj, weighted_adj)
    (histories, path_maps) = jax.block_until_ready((histories, path_maps))

    assert histories.shape == (N,) and path_maps.shape == (N,)
    assert float(histories[start_index]) == 1.0        # start is expanded first
    assert float(histories.sum()) > 0.0
    assert int(path_maps[goal_index]) == 1
    assert bool(jnp.all((histories == 0.0) | (histories == 1.0)))
    print("KERNEL_OK")
</pallas_src>

<mosaic_0001>
module attributes {stable_mosaic.version = 11 : i64} {
  func.func @_astar_forward_kernel(%arg0: memref<2xi32, #tpu.memory_space<smem>>, %arg1: memref<1x128xf32, #tpu.memory_space<vmem>>, %arg2: memref<128x1x128xf32, #tpu.memory_space<vmem>>, %arg3: memref<1x128xf32, #tpu.memory_space<vmem>>, %arg4: memref<1x128xi32, #tpu.memory_space<vmem>>, %arg5: memref<1xi32, #tpu.memory_space<smem>>) attributes {dimension_semantics = [], scalar_prefetch = 0 : i64, scratch_operands = 0 : i64, tpu.core_type = #tpu.core_type<tc>} {
    %c0 = arith.constant 0 : index
    %0 = memref.load %arg0[%c0] : memref<2xi32, #tpu.memory_space<smem>>
    %c1 = arith.constant 1 : index
    %1 = memref.load %arg0[%c1] : memref<2xi32, #tpu.memory_space<smem>>
    %2 = tpu.iota {dimensions = array<i32: 0>} : vector<1x128xi32>
    %c128_i32 = arith.constant 128 : i32
    %3 = vector.broadcast %c128_i32 : i32 to vector<1x128xi32>
    %4 = arith.muli %2, %3 : vector<1x128xi32>
    %5 = tpu.iota {dimensions = array<i32: 1>} : vector<1x128xi32>
    %6 = arith.addi %4, %5 : vector<1x128xi32>
    %c0_0 = arith.constant 0 : index
    %c0_1 = arith.constant 0 : index
    %7 = vector.load %arg1[%c0_0, %c0_1] : memref<1x128xf32, #tpu.memory_space<vmem>>, vector<1x128xf32>
    %8 = arith.index_cast %0 : i32 to index
    %c0_2 = arith.constant 0 : index
    %c0_3 = arith.constant 0 : index
    %9 = vector.load %arg2[%8, %c0_2, %c0_3] : memref<128x1x128xf32, #tpu.memory_space<vmem>>, vector<1x1x128xf32>
    %10 = vector.shape_cast %9 : vector<1x1x128xf32> to vector<1x128xf32>
    %cst = arith.constant 0x7F800000 : f32
    %11 = vector.broadcast %cst : f32 to vector<1x128xf32>
    %12 = arith.cmpf oeq, %10, %11 : vector<1x128xf32>
    %13 = vector.broadcast %0 : i32 to vector<1x128xi32>
    %14 = arith.cmpi eq, %6, %13 : vector<1x128xi32>
    %15 = arith.ori %12, %14 : vector<1x128xi1>
    %cst_4 = arith.constant 0.000000e+00 : f32
    %16 = vector.broadcast %cst_4 : f32 to vector<1x128xf32>
    %17 = arith.select %15, %16, %10 : vector<1x128xi1>, vector<1x128xf32>
    %18 = vector.broadcast %0 : i32 to vector<1x128xi32>
    %19 = arith.cmpi eq, %6, %18 : vector<1x128xi32>
    %20 = arith.extui %19 : vector<1x128xi1> to vector<1x128xi32>
    %21 = arith.sitofp %20 : vector<1x128xi32> to vector<1x128xf32>
    %cst_5 = arith.constant 0.000000e+00 : f32
    %22 = vector.broadcast %cst_5 : f32 to vector<1x128xf32>
    %23 = vector.broadcast %1 : i32 to vector<1x128xi32>
    %c0_i32 = arith.constant 0 : i32
    %c0_i32_6 = arith.constant 0 : i32
    %c0_i32_7 = arith.constant 0 : i32
    %24:7 = scf.while (%arg6 = %17, %arg7 = %21, %arg8 = %22, %arg9 = %23, %arg10 = %c0_i32, %arg11 = %c0_i32_6, %arg12 = %c0_i32_7) : (vector<1x128xf32>, vector<1x128xf32>, vector<1x128xf32>, vector<1x128xi32>, i32, i32, i32) -> (vector<1x128xf32>, vector<1x128xf32>, vector<1x128xf32>, vector<1x128xi32>, i32, i32, i32) {
      %c32_i32 = arith.constant 32 : i32
      %28 = arith.cmpi slt, %arg10, %c32_i32 : i32
      %c0_i32_13 = arith.constant 0 : i32
      %29 = arith.cmpi eq, %arg12, %c0_i32_13 : i32
      %30 = arith.andi %28, %29 : i1
      scf.condition(%30) %arg6, %arg7, %arg8, %arg9, %arg10, %arg11, %arg12 : vector<1x128xf32>, vector<1x128xf32>, vector<1x128xf32>, vector<1x128xi32>, i32, i32, i32
    } do {
    ^bb0(%arg6: vector<1x128xf32>, %arg7: vector<1x128xf32>, %arg8: vector<1x128xf32>, %arg9: vector<1x128xi32>, %arg10: i32, %arg11: i32, %arg12: i32):
      %cst_13 = arith.constant 5.000000e-01 : f32
      %28 = vector.broadcast %cst_13 : f32 to vector<1x128xf32>
      %29 = arith.mulf %28, %arg6 : vector<1x128xf32>
      %cst_14 = arith.constant 5.000000e-01 : f32
      %30 = vector.broadcast %cst_14 : f32 to vector<1x128xf32>
      %31 = arith.mulf %30, %7 : vector<1x128xf32>
      %32 = arith.addf %29, %31 : vector<1x128xf32>
      %cst_15 = arith.constant 0.000000e+00 : f32
      %33 = vector.broadcast %cst_15 : f32 to vector<1x128xf32>
      %34 = arith.cmpf ogt, %arg7, %33 : vector<1x128xf32>
      %cst_16 = arith.constant 0x7F800000 : f32
      %35 = vector.broadcast %cst_16 : f32 to vector<1x128xf32>
      %36 = arith.select %34, %32, %35 : vector<1x128xi1>, vector<1x128xf32>
      %37 = vector.shape_cast %36 : vector<1x128xf32> to vector<1x1x128xf32>
      %cst_17 = arith.constant dense<0x7F800000> : vector<1xf32>
      %38 = vector.multi_reduction <minimumf>, %37, %cst_17 [1, 2] : vector<1x1x128xf32> to vector<1xf32>
      %39 = vector.shape_cast %38 : vector<1xf32> to vector<1x1x1xf32>
      %40 = vector.extract %39[0, 0, 0] : f32 from vector<1x1x1xf32>
      %41 = vector.broadcast %40 : f32 to vector<1x128xf32>
      %42 = arith.cmpf oeq, %36, %41 : vector<1x128xf32>
      %c128_i32_18 = arith.constant 128 : i32
      %43 = vector.broadcast %c128_i32_18 : i32 to vector<1x128xi32>
      %44 = arith.select %42, %6, %43 : vector<1x128xi1>, vector<1x128xi32>
      %45 = vector.shape_cast %44 : vector<1x128xi32> to vector<1x1x128xi32>
      %cst_19 = arith.constant dense<2147483647> : vector<1xi32>
      %46 = vector.multi_reduction <minsi>, %45, %cst_19 [1, 2] : vector<1x1x128xi32> to vector<1xi32>
      %47 = vector.shape_cast %46 : vector<1xi32> to vector<1x1x1xi32>
      %48 = vector.extract %47[0, 0, 0] : i32 from vector<1x1x1xi32>
      %49 = arith.cmpi eq, %48, %1 : i32
      %50 = vector.broadcast %48 : i32 to vector<1x128xi32>
      %51 = arith.cmpi eq, %6, %50 : vector<1x128xi32>
      %cst_20 = arith.constant 1.000000e+00 : f32
      %52 = vector.broadcast %cst_20 : f32 to vector<1x128xf32>
      %53 = arith.select %51, %52, %arg8 : vector<1x128xi1>, vector<1x128xf32>
      %cst_21 = arith.constant 0.000000e+00 : f32
      %54 = vector.broadcast %cst_21 : f32 to vector<1x128xf32>
      %55 = arith.select %51, %arg6, %54 : vector<1x128xi1>, vector<1x128xf32>
      %56 = vector.shape_cast %55 : vector<1x128xf32> to vector<1x1x128xf32>
      %cst_22 = arith.constant dense<0.000000e+00> : vector<1xf32>
      %57 = vector.multi_reduction <add>, %56, %cst_22 [1, 2] : vector<1x1x128xf32> to vector<1xf32>
      %58 = vector.shape_cast %57 : vector<1xf32> to vector<1x1x1xf32>
      %59 = vector.extract %58[0, 0, 0] : f32 from vector<1x1x1xf32>
      %60 = arith.index_cast %48 : i32 to index
      %c0_23 = arith.constant 0 : index
      %c0_24 = arith.constant 0 : index
      %61 = vector.load %arg2[%60, %c0_23, %c0_24] : memref<128x1x128xf32, #tpu.memory_space<vmem>>, vector<1x1x128xf32>
      %62 = vector.shape_cast %61 : vector<1x1x128xf32> to vector<1x128xf32>
      %cst_25 = arith.constant 0x7F800000 : f32
      %63 = vector.broadcast %cst_25 : f32 to vector<1x128xf32>
      %64 = arith.cmpf one, %62, %63 : vector<1x128xf32>
      %65 = vector.broadcast %59 : f32 to vector<1x128xf32>
      %66 = arith.addf %65, %62 : vector<1x128xf32>
      %cst_26 = arith.constant 0.000000e+00 : f32
      %67 = vector.broadcast %cst_26 : f32 to vector<1x128xf32>
      %68 = arith.cmpf oeq, %arg7, %67 : vector<1x128xf32>
      %cst_27 = arith.constant 0.000000e+00 : f32
      %69 = vector.broadcast %cst_27 : f32 to vector<1x128xf32>
      %70 = arith.cmpf oeq, %53, %69 : vector<1x128xf32>
      %71 = arith.andi %68, %70 : vector<1x128xi1>
      %cst_28 = arith.constant 0.000000e+00 : f32
      %72 = vector.broadcast %cst_28 : f32 to vector<1x128xf32>
      %73 = arith.cmpf ogt, %arg7, %72 : vector<1x128xf32>
      %74 = arith.cmpf ogt, %arg6, %66 : vector<1x128xf32>
      %75 = arith.andi %73, %74 : vector<1x128xi1>
      %76 = arith.ori %71, %75 : vector<1x128xi1>
      %77 = arith.andi %76, %64 : vector<1x128xi1>
      %78 = arith.select %77, %66, %arg6 : vector<1x128xi1>, vector<1x128xf32>
      %cst_29 = arith.constant 1.000000e+00 : f32
      %79 = vector.broadcast %cst_29 : f32 to vector<1x128xf32>
      %80 = arith.select %77, %79, %arg7 : vector<1x128xi1>, vector<1x128xf32>
      %81 = vector.broadcast %48 : i32 to vector<1x128xi32>
      %82 = arith.select %77, %81, %arg9 : vector<1x128xi1>, vector<1x128xi32>
      %c1_i32 = arith.constant 1 : i32
      %83 = arith.addi %arg10, %c1_i32 : i32
      %84 = arith.extui %49 : i1 to i32
      scf.yield %78, %80, %53, %82, %83, %arg10, %84 : vector<1x128xf32>, vector<1x128xf32>, vector<1x128xf32>, vector<1x128xi32>, i32, i32, i32
    }
    %c0_8 = arith.constant 0 : index
    %c0_9 = arith.constant 0 : index
    %25 = vector.load %arg3[%c0_8, %c0_9] : memref<1x128xf32, #tpu.memory_space<vmem>>, vector<1x128xf32>
    tpu.vector_store %arg3[%c0_8, %c0_9], %24#2 {strides = array<i32>} : memref<1x128xf32, #tpu.memory_space<vmem>>, vector<1x128xf32>,
    %c0_10 = arith.constant 0 : index
    %c0_11 = arith.constant 0 : index
    %26 = vector.load %arg4[%c0_10, %c0_11] : memref<1x128xi32, #tpu.memory_space<vmem>>, vector<1x128xi32>
    tpu.vector_store %arg4[%c0_10, %c0_11], %24#3 {strides = array<i32>} : memref<1x128xi32, #tpu.memory_space<vmem>>, vector<1x128xi32>,
    %c0_12 = arith.constant 0 : index
    %27 = memref.load %arg5[%c0_12] : memref<1xi32, #tpu.memory_space<smem>>
    memref.store %24#5, %arg5[%c0_12] : memref<1xi32, #tpu.memory_space<smem>>
    return
  }
}

</mosaic_0001>

<bundles_post_ra>
// kernel: tpu_custom_call.1
= control target key start
LH: loop header
LB: loop body
LE: loop exit
PB: predicated region body
PF: predicated region fallthrough
CT: control target
= control target key end

     0   :  { %11 = vsyncpa [#allocation5], 0  ;;  %s592_s0 = inlined_call_operand.hbm [shape: s32[2], index: 0, kind: input, shape index: {}]   ;;  %s593_s1 = inlined_call_operand.vmem [shape: f32[1,128], index: 1, kind: input, shape index: {}]   ;;  %s594_s2 = inlined_call_operand.hbm [shape: f32[128,1,128], index: 2, kind: input, shape index: {}]   ;;  %s595_s3 = inlined_call_operand.hbm [shape: f32[1,128], index: 3, kind: output, shape index: {0}]   ;;  %s596_s4 = inlined_call_operand.hbm [shape: s32[1,128], index: 4, kind: output, shape index: {1}]   ;;  %s597_s5 = inlined_call_operand.hbm [shape: s32[1], index: 5, kind: output, shape index: {2}]  }
   0x1   :  { %12 = vsyncpa [#allocation3], 0 }
   0x2   :  { %13 = vsyncpa [#allocation4], 0 }
   0x3   :  { %14 = vsyncpa [#allocation10], 0 }
   0x4   :  { %15 = vsyncpa [#allocation6], 0  ;;  %s282_s20 = scalar_lea.hbm %s592_s0, 16 }
   0x5   :  { %p283_p0 = scmp.ne.s32.totalorder %s592_s0, %s282_s20  ;;  %p286_p1 = scmp.lt.u32.totalorder %s282_s20, %s592_s0 }
   0x7   :  { %p288_p2 = pnand %p286_p1, %p283_p0 }
   0x9   :  { %291 = shalt.err (!%p288_p2)
}
   0xa   :  { %s418_s25 = smov [#allocation2]   ;;  %s419_s28 = smov [#allocation7]  }
   0xb   :  { %23 = dma.hbm_to_smem %s592_s0, 16, %s418_s25, [#allocation5]  }
   0xc   :  { %s31_s29 = sshll.u32 %s419_s28, 4  ;;  %s292_s7 = scalar_lea.hbm %s594_s2, 2048  ;;  %s32_s29 = int_to_ptr.vmem [resolvable:$true] %s31_s29 }
   0xd   :  { %p293_p3 = scmp.ne.s32.totalorder %s594_s2, %s292_s7  ;;  %p296_p4 = scmp.lt.u32.totalorder %s292_s7, %s594_s2 }
   0xf   :  { %p298_p5 = pnand %p296_p4, %p293_p3 }
  0x11   :  { %301 = shalt.err (!%p298_p5)
}
  0x12   :  { %s302_s12 = scalar_lea.vmem %s32_s29, 2048  ;;  %p307_p7 = scmp.lt.s32.totalorder %s32_s29, %s32_s29 }
  0x13   :  { %p303_p6 = scmp.ne.s32.totalorder %s32_s29, %s302_s12  ;;  %p308_p8 = scmp.lt.s32.totalorder %s302_s12, %s302_s12 }
  0x15   :  { %p309_p9 = por %p308_p8, %p307_p7 }
  0x17   :  { %p310_p10 = pnand %p309_p9, %p303_p6 }
  0x19   :  { %313 = shalt.err (!%p310_p10)
}
  0x1a   :  { %s420_s0 = smov 16   ;;  %s421_s13 = smov 1  }
  0x1b   :  { %37 = dma.hbm_to_vmem [thread:$0]  %s594_s2, 2048, %s32_s29, [#allocation3], %s420_s0, %s420_s0, %s421_s13  }
  0x1c   :  { %388 = dma.done.wait [#allocation5], 16  }
  0x1d   :  { %389 = vsyncadd [#allocation5], 4294967280 }
  0x1e   :  { %390 = dma.done.wait [#allocation3], 2048  }
  0x1f   :  { %391 = vsyncadd [#allocation3], 4294965248 }
  0x20   :  { %44 = sfence }
  0x21   :  { %s45_s16 = sld [smem:[#allocation2]]  ;;  %s480_s17 = sld [smem:[#allocation2 + $0x1]]  ;;  %v47_v0 = vlaneseq  ;;  %v485_v1 = vld [vmem:[%s593_s1] sm:$0x1]  ;;  %v422_v9 = vmov 0.0   ;;  %v495_v12 = vmov 0.0  }
  0x22   :  { %s491_s20 = smov 0  }
  0x23   :  { %v48_v2 = vshrl.u32 %v47_v0, 7  ;;  %v51_v3 = vand.u32 127, %v47_v0 }
  0x25   :  { %v49_v4 = vmul.u32 128, %v48_v2 }
  0x27   :  { %v487_v5 = vadd.s32 %v51_v3, %v49_v4  ;;  %v57_v6 = vstv %s45_s16  ;;  %v63_v7 = vstv %s480_s17   ;;  %s54_s2 = scalar_lea.vmem [#allocation7], %s45_s16 }
  0x28   :  { %v55_v8 = vld [vmem:[%s54_s2] sm:$0x1] }
  0x29   :  { %vm56_vm0 = vcmp.eq.f32.partialorder %v55_v8, inf  ;;  %vm58_vm1 = vcmp.eq.s32.totalorder %v487_v5, %v57_v6 }
  0x2a   :  { %vm59_vm2 = vmor %vm56_vm0, %vm58_vm1  ;;  %v227_v10 = vsel %vm58_vm1, 1.0, %v422_v9  }
  0x2b   :  { %v60_v11 = vsel %vm59_vm2, 0.0, %v55_v8  }
  0x2c LB: > { %s598_s1 = smov %s400_s20  ;;  %v79_v13 = vmul.f32 0.5, %v485_v1  ;;  %v78_v14 = vmul.f32 0.5, %v416_v11  ;;  %vm81_vm3 = vcmp.gt.f32.partialorder %v412_v10, 0.0  ;;  %vm83_vm4 = vcmask 1040384   ;;  %v416_v11 = vphi %v60_v11, %v149_v11   ;;  %v412_v10 = vphi %v227_v10, %v150_v10   ;;  %v408_v12 = vphi %v495_v12, %v600_v12   ;;  %v404_v7 = vphi %v63_v7, %v599_v7   ;;  %s400_s20 = sphi %s491_s20, %s152_s20  }
  0x2d   : > { %s152_s20 = sadd.s32 1, %s598_s1   ;;  %vm142_vm11 = vcmp.eq.f32.partialorder %v412_v10, 0.0 }
  0x2e   : > { %v80_v15 = vadd.f32 %v79_v13, %v78_v14  ;;  %p72_p12 = scmp.lt.s32.totalorder %s152_s20, 32 }
  0x30   : > { %v82_v16 = vsel %vm81_vm3, %v80_v15, inf }
  0x31   : > { %v84_v17 = vsel %vm83_vm4, %v82_v16, inf }
  0x32   : > { %85 = vmin.xlane.f32.xlu0 %v84_v17 }
  0xbf   : > { %v86_v18 = vpop.xlane.xlu0 %85 }
  0xc0   : > { %v87_v19 = vrot.slane %v86_v18, 4 }
  0xc2   : > { %v88_v20 = vmin.f32 %v86_v18, %v87_v19 }
  0xc4   : > { %v89_v21 = vrot.slane %v88_v20, 2 }
  0xc6   : > { %v90_v22 = vmin.f32 %v88_v20, %v89_v21 }
  0xc8   : > { %v91_v23 = vrot.slane %v90_v22, 1 }
  0xca   : > { %v92_v24 = vmin.f32 %v90_v22, %v91_v23 }
  0xcc   : > { %228 = vpush %v92_v24 }
  0xfd   : > { %s229_s21 = spop %228 }
  0xfe   : > { %v94_v25 = vstv %s229_s21 }
  0xff   : > { %vm95_vm5 = vcmp.eq.f32.partialorder %v82_v16, %v94_v25 }
 0x100   : > { %v96_v26 = vsel %vm95_vm5, %v487_v5, 128 }
 0x101   : > { %v97_v27 = vsel %vm83_vm4, %v96_v26, 2147483647 }
 0x102   : > { %v99_v28 = vshra.s32 %v97_v27, 16  ;;  %v98_v30 = vand.u32 65535, %v97_v27 }
 0x104   : > { %v101_v29 = vcvt.s32.f32 %v99_v28  ;;  %v100_v32 = vcvt.s32.f32 %v98_v30 }
 0x106   : > { %102 = vmin.xlane.f32.xlu0 %v101_v29 }
 0x193   : > { %v103_v31 = vpop.xlane.xlu0 %102 }
 0x194   : > { %vm104_vm6 = vcmp.eq.f32.partialorder %v101_v29, %v103_v31  ;;  %v109_v34 = vcvt.f32.s32 %v103_v31 }
 0x195   : > { %v105_v33 = vsel %vm104_vm6, %v100_v32, inf }
 0x196   : > { %106 = vmin.xlane.f32.xlu1 %v105_v33  ;;  %v110_v36 = vshll.u32 %v109_v34, 16 }
 0x223   : > { %v107_v35 = vpop.xlane.xlu1 %106 }
 0x224   : > { %v108_v37 = vcvt.f32.s32 %v107_v35 }
 0x226   : > { %v111_v38 = vadd.s32 %v110_v36, %v108_v37 }
 0x228   : > { %v112_v39 = vrot.slane %v111_v38, 4 }
 0x22a   : > { %vm113_vm7 = vcmp.lt.s32.totalorder %v111_v38, %v112_v39 }
 0x22b   : > { %v114_v40 = vsel %vm113_vm7, %v111_v38, %v112_v39 }
 0x22c   : > { %v115_v41 = vrot.slane %v114_v40, 2 }
 0x22e   : > { %vm116_vm8 = vcmp.lt.s32.totalorder %v114_v40, %v115_v41 }
 0x22f   : > { %v117_v42 = vsel %vm116_vm8, %v114_v40, %v115_v41 }
 0x230   : > { %v118_v43 = vrot.slane %v117_v42, 1 }
 0x232   : > { %vm119_vm9 = vcmp.lt.s32.totalorder %v117_v42, %v118_v43 }
 0x233   : > { %v120_v44 = vsel %vm119_vm9, %v117_v42, %v118_v43 }
 0x234   : > { %230 = vpush %v120_v44 }
 0x265   : > { %s524_s22 = spop %230 }
 0x266   : > { %p122_p11 = scmp.eq.s32.totalorder %s524_s22, %s480_s17  ;;  %v123_v45 = vstv %s524_s22  ;;  %s137_s25 = scalar_lea.vmem [#allocation7], %s524_s22 }
 0x267   : > { %vm124_vm10 = vcmp.eq.s32.totalorder %v487_v5, %v123_v45  ;;  %v138_v56 = vld [vmem:[%s137_s25] sm:$0x1] }
 0x268   : > { %s530_s23 = scalar_select %p122_p11, 1, 0  ;;  %v126_v46 = vsel %vm124_vm10, %v416_v11, 0.0  ;;  %v125_v55 = vsel %vm124_vm10, 1.0, %v408_v12   ;;  %vm139_vm0 = vcmp.ne.f32.partialorder %v138_v56, inf }
 0x269   : > { %v127_v47 = vsel %vm83_vm4, %v126_v46, 0.0  ;;  %vm143_vm12 = vcmp.eq.f32.partialorder %v125_v55, 0.0  ;;  %v600_v12 = vmov %v125_v55 }
 0x26a   : > { %128 = vadd.xlane.f32.xlu1 %v127_v47  ;;  %vm144_vm13 = vmand %vm142_vm11, %vm143_vm12  ;;  %p73_p13 = scmp.eq.s32.totalorder %s530_s23, 0 }
 0x26c   : > { %p74_p0 = pnand %p73_p13, %p72_p12 }
 0x26d   :  { %154 = vst [vmem:[#allocation8] sm:$0x1] (%p74_p0), %v125_v55  ;;  %s423_s26 = smov (%p74_p0), [#allocation8]   ;;  %s424_s28 = smov (%p74_p0), [#allocation9]  }
 0x26e   :  { %s164_s27 = sshll.u32 (%p74_p0), %s423_s26, 4  ;;  %s174_s29 = sshll.u32 (%p74_p0), %s424_s28, 4  ;;  %s165_s27 = int_to_ptr.vmem [resolvable:$true] %s164_s27  ;;  %s175_s29 = int_to_ptr.vmem [resolvable:$true] %s174_s29 }
 0x26f   :  { %s314_s30 = scalar_lea.vmem (%p74_p0), %s165_s27, 16  ;;  %s318_s6 = scalar_lea.vmem (%p74_p0), %s165_s27, 32 }
 0x270   :  { %p315_p1 = scmp.ne.s32.totalorder (%p74_p0), %s165_s27, %s314_s30  ;;  %p319_p2 = scmp.lt.s32.totalorder (%p74_p0), %s165_s27, %s165_s27 }
 0x271   :  { %p320_p3 = scmp.lt.s32.totalorder (%p74_p0), %s318_s6, %s314_s30 }
 0x273   :  { %p321_p4 = por (%p74_p0), %p320_p3, %p319_p2 }
 0x275   :  { %p322_p5 = pnand (%p74_p0), %p321_p4, %p315_p1 }
 0x2f7   : > { %v129_v48 = vpop.xlane.xlu1 %128 }
 0x2f8   : > { %v130_v49 = vrot.slane %v129_v48, 4 }
 0x2fa   : > { %v131_v50 = vadd.f32 %v130_v49, %v129_v48 }
 0x2fc   : > { %v132_v51 = vrot.slane %v131_v50, 2 }
 0x2fe   : > { %v133_v52 = vadd.f32 %v132_v51, %v131_v50 }
 0x300   : > { %v134_v53 = vrot.slane %v133_v52, 1 }
 0x302   : > { %v135_v54 = vadd.f32 %v134_v53, %v133_v52 }
 0x304   : > { %232 = vpush %v135_v54 }
 0x335   : > { %s233_s24 = spop %232 }
 0x336   : > { %v140_v57 = vstv %s233_s24 }
 0x337   : > { %v141_v58 = vadd.f32 %v140_v57, %v138_v56 }
 0x338   :  { %77 = sbr.rel (!%p74_p0) target bundleno = 44 (0x2c), region = 66 }
 0x339   : > { %vm145_vm14 = vcmp.gt.f32.partialorder %v416_v11, %v141_v58 }
 0x33a   : > { %vm146_vm15 = vmand %vm81_vm3, %vm145_vm14 }
 0x33b   : > { %vm147_vm1 = vmor %vm144_vm13, %vm146_vm15 }
 0x33c   : > { %vm148_vm2 = vmand %vm147_vm1, %vm139_vm0 }
 0x33d   : > { %v149_v11 = vsel %vm148_vm2, %v141_v58, %v416_v11   ;;  %v150_v10 = vsel %vm148_vm2, 1.0, %v412_v10   ;;  %v151_v59 = vsel %vm148_vm2, %v123_v45, %v404_v7  }
 0x33e   : > { %v599_v7 = vmov %v151_v59  ;;  %155 = vst [vmem:[#allocation9] sm:$0x1] (%p74_p0), %v151_v59 }
 0x33f   :  { %325 = shalt.err (!%p322_p5)
}
 0x340   :  { %s326_s9 = scalar_lea.hbm %s595_s3, 16 }
 0x341   :  { %p327_p6 = scmp.ne.s32.totalorder %s595_s3, %s326_s9  ;;  %p330_p7 = scmp.lt.u32.totalorder %s326_s9, %s595_s3 }
 0x343   :  { %p332_p8 = pnand %p330_p7, %p327_p6 }
 0x345   :  { %335 = shalt.err (!%p332_p8)
}
 0x346   :  { %167 = dma.vmem_to_hbm [thread:$0]  %s165_s27, 16, %s595_s3, [#allocation4]  }
 0x347   :  { %s336_s15 = scalar_lea.vmem %s175_s29, 16  ;;  %s340_s16 = scalar_lea.vmem %s175_s29, 32 }
 0x348   :  { %p337_p9 = scmp.ne.s32.totalorder %s175_s29, %s336_s15  ;;  %p341_p10 = scmp.lt.s32.totalorder %s175_s29, %s175_s29 }
 0x349   :  { %p342_p11 = scmp.lt.s32.totalorder %s340_s16, %s336_s15 }
 0x34b   :  { %p343_p12 = por %p342_p11, %p341_p10 }
 0x34d   :  { %p344_p13 = pnand %p343_p12, %p337_p9 }
 0x34f   :  { %347 = shalt.err (!%p344_p13)
}
 0x350   :  { %s348_s19 = scalar_lea.hbm %s596_s4, 16 }
 0x351   :  { %p349_p0 = scmp.ne.s32.totalorder %s596_s4, %s348_s19  ;;  %p352_p1 = scmp.lt.u32.totalorder %s348_s19, %s596_s4 }
 0x353   :  { %p354_p2 = pnand %p352_p1, %p349_p0 }
 0x355   :  { %357 = shalt.err (!%p354_p2)
}
 0x356   :  { %177 = dma.vmem_to_hbm [thread:$0]  %s175_s29, 16, %s596_s4, [#allocation10]  }
 0x357   :  { %157 = sst [smem:[#allocation11]] %s598_s1  ;;  %s358_s26 = scalar_lea.hbm %s597_s5, 16 }
 0x358   :  { %p359_p3 = scmp.ne.s32.totalorder %s597_s5, %s358_s26  ;;  %p362_p4 = scmp.lt.u32.totalorder %s358_s26, %s597_s5 }
 0x35a   :  { %p364_p5 = pnand %p362_p4, %p359_p3 }
 0x35c   :  { %367 = shalt.err (!%p364_p5)
}
 0x35d   :  { %s425_s7 = smov [#allocation11]  }
 0x35e   :  { %185 = dma.smem_to_hbm %s425_s7, 16, %s597_s5, [#allocation6]  }
 0x35f   :  { %392 = dma.done.wait [#allocation4], 16  }
 0x360   :  { %393 = vsyncadd [#allocation4], 4294967280 }
 0x361   :  { %394 = dma.done.wait [#allocation10], 16  }
 0x362   :  { %395 = vsyncadd [#allocation10], 4294967280 }
 0x363   :  { %396 = dma.done.wait [#allocation6], 16  }
 0x364   :  { %397 = vsyncadd [#allocation6], 4294967280 }
 0x365   :  { %195 = sfence }
 0x366   :  { %196 = vsyncpa [#allocation3], 1 }
 0x367   :  { %197 = vsyncpa [#allocation4], 1 }
 0x368   :  { %198 = vsyncpa [#allocation10], 1 }
 0x369   :  { %199 = vsyncpa [#allocation5], 1 }
 0x36a   :  { %200 = vsyncpa [#allocation6], 1 }

</bundles_post_ra>
